<compile_context>
chip_gen: v7x
topology: tpu7x:2x2x1
jax: 0.10.0
libtpu: 0.0.40
codegen_flags: <defaults>
</compile_context>

<pallas_src>
import jax
import jax.numpy as jnp
from jax.experimental import pallas as pl
from jax.experimental.pallas import tpu as pltpu


def logreg_kernel(wb_ref, x_ref, o_ref):
    # wb_ref: SMEM f32[4] = [w0, w1, w2, b]   (resident for the whole kernel)
    # x_ref:  VMEM (TB, 3) f32 -- TB feature rows, rows on the sublane axis
    # o_ref:  VMEM (TB, 1) f32
    w0 = wb_ref[0]
    w1 = wb_ref[1]
    w2 = wb_ref[2]
    b = wb_ref[3]
    x = x_ref[...]
    # Deinterleave the 3 feature lanes in-register: three lane slices + VPU
    # multiply-adds.  Garbage rows of a partial last block are computed on but
    # masked away on writeback (no cross-row mixing), so correctness holds.
    acc = x[:, 0:1] * w0 + x[:, 1:2] * w1 + x[:, 2:3] * w2 + b
    o_ref[...] = acc.astype(o_ref.dtype)


def logreg_forward(features, weight, bias, *, block_rows=8192,
                   vmem_limit_bytes=48 * 1024 * 1024):
    """features: (B, 3) f32, weight: (1, 3) f32, bias: (1,) f32 -> (B, 1) f32."""
    B, F = features.shape
    assert F == 3

    wb = jnp.concatenate(
        [weight.reshape(-1), bias.reshape(-1)]).astype(jnp.float32)   # f32[4]

    # Row tile: large to amortize per-step pipeline overhead.  Rows map to
    # sublanes, so the block's row count must be a multiple of 8 unless the
    # single block covers the whole array (tiny-batch case).
    if B <= block_rows:
        tb = B
    else:
        tb = (block_rows // 8) * 8
    grid = (pl.cdiv(B, tb),)

    out = pl.pallas_call(
        logreg_kernel,
        out_shape=jax.ShapeDtypeStruct((B, 1), features.dtype),
        grid_spec=pltpu.PrefetchScalarGridSpec(
            num_scalar_prefetch=0,
            grid=grid,
            in_specs=[
                # Non-blocked SMEM operand: loaded once, not per grid step.
                pl.BlockSpec(memory_space=pltpu.MemorySpace.SMEM),
                # Streaming row block of the untransposed (B, 3) features.
                pl.BlockSpec((tb, F), lambda i: (i, 0)),
            ],
            out_specs=pl.BlockSpec((tb, 1), lambda i: (i, 0)),
        ),
        compiler_params=pltpu.CompilerParams(
            dimension_semantics=("parallel",),
            vmem_limit_bytes=vmem_limit_bytes,
        ),
        cost_estimate=pl.CostEstimate(
            flops=6 * B, transcendentals=0, bytes_accessed=16 * B + 16),
    )(wb, features)
    return out


if __name__ == "__main__":
    key = jax.random.PRNGKey(0)
    k_x, k_w, k_b, k_x2 = jax.random.split(key, 4)

    IN, OUT = 3, 1
    # Deterministic nn.Linear-style init: U(-1/sqrt(in), 1/sqrt(in))
    bound = 1.0 / jnp.sqrt(jnp.float32(IN))
    weight = jax.random.uniform(k_w, (OUT, IN), jnp.float32, -bound, bound)
    bias = jax.random.uniform(k_b, (OUT,), jnp.float32, -bound, bound)

    # Small case, matching the module's tiny sentiment-analysis input.
    B1 = 8
    x1 = jax.random.normal(k_x, (B1, IN), jnp.float32)
    out1 = jax.block_until_ready(logreg_forward(x1, weight, bias))
    ref1 = x1 @ weight.T + bias
    assert out1.shape == (B1, 1)
    assert jnp.allclose(out1, ref1, atol=1e-5, rtol=1e-5)

    # Larger case: exercises a multi-step "parallel" grid plus a partial,
    # non-multiple-of-8 tail block (masked writeback path).
    B2 = 12001
    x2 = jax.random.normal(k_x2, (B2, IN), jnp.float32)
    out2 = jax.block_until_ready(logreg_forward(x2, weight, bias))
    ref2 = x2 @ weight.T + bias
    assert out2.shape == (B2, 1)
    assert jnp.allclose(out2, ref2, atol=1e-5, rtol=1e-5)

    print("KERNEL_OK")
</pallas_src>

<mosaic_0001>
module attributes {stable_mosaic.version = 11 : i64} {
  func.func @logreg_kernel(%arg0: i32, %arg1: memref<4xf32, #tpu.memory_space<smem>>, %arg2: memref<8x3xf32, #tpu.memory_space<vmem>>, %arg3: memref<8x1xf32, #tpu.memory_space<vmem>>) attributes {dimension_semantics = [#tpu.dimension_semantics<parallel>], iteration_bounds = array<i64: 1>, scalar_prefetch = 0 : i64, scratch_operands = 0 : i64, tpu.core_type = #tpu.core_type<tc>, window_params = [{transform_indices = @transform_0, window_bounds = array<i64: 4>}, {transform_indices = @transform_1, window_bounds = array<i64: 8, 3>}, {transform_indices = @transform_2, window_bounds = array<i64: 8, 1>}]} {
    %c0 = arith.constant 0 : index
    %0 = memref.load %arg1[%c0] : memref<4xf32, #tpu.memory_space<smem>>
    %c1 = arith.constant 1 : index
    %1 = memref.load %arg1[%c1] : memref<4xf32, #tpu.memory_space<smem>>
    %c2 = arith.constant 2 : index
    %2 = memref.load %arg1[%c2] : memref<4xf32, #tpu.memory_space<smem>>
    %c3 = arith.constant 3 : index
    %3 = memref.load %arg1[%c3] : memref<4xf32, #tpu.memory_space<smem>>
    %c0_0 = arith.constant 0 : index
    %c0_1 = arith.constant 0 : index
    %4 = vector.load %arg2[%c0_0, %c0_1] : memref<8x3xf32, #tpu.memory_space<vmem>>, vector<8x3xf32>
    %5 = vector.extract_strided_slice %4 {offsets = [0, 0], sizes = [8, 1], strides = [1, 1]} : vector<8x3xf32> to vector<8x1xf32>
    %6 = vector.broadcast %0 : f32 to vector<8x1xf32>
    %7 = arith.mulf %5, %6 : vector<8x1xf32>
    %8 = vector.extract_strided_slice %4 {offsets = [0, 1], sizes = [8, 1], strides = [1, 1]} : vector<8x3xf32> to vector<8x1xf32>
    %9 = vector.broadcast %1 : f32 to vector<8x1xf32>
    %10 = arith.mulf %8, %9 : vector<8x1xf32>
    %11 = arith.addf %7, %10 : vector<8x1xf32>
    %12 = vector.extract_strided_slice %4 {offsets = [0, 2], sizes = [8, 1], strides = [1, 1]} : vector<8x3xf32> to vector<8x1xf32>
    %13 = vector.broadcast %2 : f32 to vector<8x1xf32>
    %14 = arith.mulf %12, %13 : vector<8x1xf32>
    %15 = arith.addf %11, %14 : vector<8x1xf32>
    %16 = vector.broadcast %3 : f32 to vector<8x1xf32>
    %17 = arith.addf %15, %16 : vector<8x1xf32>
    %c0_2 = arith.constant 0 : index
    %c0_3 = arith.constant 0 : index
    %18 = vector.load %arg3[%c0_2, %c0_3] : memref<8x1xf32, #tpu.memory_space<vmem>>, vector<8x1xf32>
    tpu.vector_store %arg3[%c0_2, %c0_3], %17 {strides = array<i32>} : memref<8x1xf32, #tpu.memory_space<vmem>>, vector<8x1xf32>,
    return
  }
  func.func @transform_0(%arg0: i32) -> i32 {
    %c0_i32 = arith.constant 0 : i32
    %c0_i32_0 = arith.constant 0 : i32
    return %c0_i32 : i32
  }
  func.func @transform_1(%arg0: i32) -> (i32, i32) {
    %c0_i32 = arith.constant 0 : i32
    %c0_i32_0 = arith.constant 0 : i32
    return %arg0, %c0_i32 : i32, i32
  }
  func.func @transform_2(%arg0: i32) -> (i32, i32) {
    %c0_i32 = arith.constant 0 : i32
    %c0_i32_0 = arith.constant 0 : i32
    return %arg0, %c0_i32 : i32, i32
  }
}

</mosaic_0001>

<bundles_post_ra>
// kernel: tpu_custom_call.1
= control target key start
LH: loop header
LB: loop body
LE: loop exit
PB: predicated region body
PF: predicated region fallthrough
CT: control target
= control target key end

     0   :  { %7 = vsyncpa [#allocation3], 0  ;;  %s101_s0 = inlined_call_operand.vmem [shape: f32[4], index: 0, kind: input, shape index: {}]   ;;  %s102_s1 = inlined_call_operand.vmem [shape: f32[8,3], index: 1, kind: input, shape index: {}]   ;;  %s103_s2 = inlined_call_operand.vmem [shape: f32[8,1], index: 2, kind: output, shape index: {}]  }
   0x1   :  { %s14_s11 = sshll.u32 %s101_s0, 4  ;;  %s15_s11 = int_to_ptr.vmem [resolvable:$true] %s14_s11 }
   0x2   :  { %s60_s12 = scalar_lea.vmem %s15_s11, 16  ;;  %p65_p1 = scmp.lt.s32.totalorder %s15_s11, %s15_s11 }
   0x3   :  { %p61_p0 = scmp.ne.s32.totalorder %s15_s11, %s60_s12  ;;  %p66_p2 = scmp.lt.s32.totalorder %s60_s12, %s60_s12 }
   0x5   :  { %p67_p3 = por %p66_p2, %p65_p1 }
   0x7   :  { %p68_p4 = pnand %p67_p3, %p61_p0 }
   0x9   :  { %71 = shalt.err (!%p68_p4)
}
   0xa   :  { %s74_s13 = smov [#allocation2]  }
   0xb   :  { %17 = dma.vmem_to_smem %s15_s11, 16, %s74_s13, [#allocation3]  }
   0xc   :  { %72 = dma.done.wait [#allocation3], 16  }
   0xd   :  { %73 = vsyncadd [#allocation3], 4294967280 }
   0xe   :  { %23 = sfence }
   0xf   :  { %s54_s14 = sld [smem:[#allocation2 + $0x1]]  ;;  %s55_s15 = sld [smem:[#allocation2 + $0x2]]  ;;  %v28_v0 = vld [vmem:[%s102_s1] sm:$0xff]  ;;  %vm47_vm0 = vcmask 7168  }
  0x10   :  { %s75_s0 = smov 127   ;;  %s76_s18 = smov 126  }
  0x11   :  { %s24_s19 = sld [smem:[#allocation2]]  ;;  %s56_s20 = sld [smem:[#allocation2 + $0x3]] }
  0x15   :  { %v31_v1 = vstv %s54_s14  ;;  %v38_v3 = vstv %s55_s15 }
  0x16   :  { %v32_v2 = vmul.f32 %v31_v1, %v28_v0  ;;  %v39_v4 = vmul.f32 %v38_v3, %v28_v0 }
  0x17   :  { %v29_v5 = vstv %s24_s19  ;;  %v45_v9 = vstv %s56_s20 }
  0x18   :  { %34 = vrot.lane.b32.xlu0 %v32_v2, %s75_s0  ;;  %v30_v6 = vmul.f32 %v29_v5, %v28_v0 }
  0x1c   :  { %41 = vrot.lane.b32.xlu0 %v39_v4, %s76_s18 }
  0x8a   :  { %v35_v7 = vpop.permute.xlu0 %34 }
  0x8b   :  { %v37_v8 = vadd.f32 %v35_v7, %v30_v6 }
  0x8e   :  { %v42_v10 = vpop.permute.xlu0 %41 }
  0x8f   :  { %v44_v11 = vadd.f32 %v42_v10, %v37_v8 }
  0x91   :  { %v46_v12 = vadd.f32 %v45_v9, %v44_v11 }
  0x93   :  { %48 = vst.msk [vmem:[%s103_s2] sm:$0xff] %vm47_vm0, %v46_v12 }
  0x94   :  { %53 = vsyncpa [#allocation3], 1 }

</bundles_post_ra>
